<compile_context>
chip_gen: v6e
topology: v6e:2x2x1
jax: 0.10.0
libtpu: 0.0.40
codegen_flags: <defaults>
</compile_context>

<pallas_src>
import jax
import jax.numpy as jnp
from jax.experimental import pallas as pl
from jax.experimental.pallas import tpu as pltpu

# ----------------------------- model hyper-params ---------------------------------
IN_FEATURES = 93
HIDDEN_SIZES = [128, 256, 128]
NUM_CLASSES = 2
BATCH = 2


# --------------------------------- Pallas kernel ----------------------------------
def _mlp_kernel(x_ref,
                w1_ref, b1_ref,      # (93, 128)  (1, 128)
                w2_ref, b2_ref,      # (128, 256) (1, 256)
                w3_ref, b3_ref,      # (256, 128) (1, 128)
                wc_ref, bc_ref,      # (128, 2)   (1, 2)
                out_ref):            # (B, 2)
    x = x_ref[...]

    h = jnp.tanh(jnp.dot(x, w1_ref[...], preferred_element_type=jnp.float32)
                 + b1_ref[...])
    h = jnp.tanh(jnp.dot(h, w2_ref[...], preferred_element_type=jnp.float32)
                 + b2_ref[...])
    h = jnp.tanh(jnp.dot(h, w3_ref[...], preferred_element_type=jnp.float32)
                 + b3_ref[...])

    out_ref[...] = (jnp.dot(h, wc_ref[...], preferred_element_type=jnp.float32)
                    + bc_ref[...])


# ------------------------------ parameter creation --------------------------------
def init_params(key):
    sizes = [IN_FEATURES] + HIDDEN_SIZES + [NUM_CLASSES]
    params = []
    ks = jax.random.split(key, 2 * (len(sizes) - 1))
    for li in range(len(sizes) - 1):
        fan_in, fan_out = sizes[li], sizes[li + 1]
        bound = 1.0 / jnp.sqrt(fan_in)
        w = jax.random.uniform(ks[2 * li], (fan_out, fan_in), jnp.float32,
                               -bound, bound)                     # PyTorch layout (out, in)
        b = jax.random.uniform(ks[2 * li + 1], (fan_out,), jnp.float32,
                               -bound, bound)
        params.append((w, b))
    return params


# --------------------------------- forward (kernel) -------------------------------
def make_forward(params):
    (w1, b1), (w2, b2), (w3, b3), (wc, bc) = params
    # pre-transpose once so the kernel does x @ W on the MXU
    w1_t, w2_t, w3_t, wc_t = w1.T, w2.T, w3.T, wc.T
    b1r, b2r, b3r, bcr = b1[None, :], b2[None, :], b3[None, :], bc[None, :]

    @jax.jit
    def forward(x):
        B = x.shape[0]
        x_flat = x.reshape(B, -1).astype(jnp.float32)       # nn.Flatten()
        vmem = pl.BlockSpec(memory_space=pltpu.MemorySpace.VMEM)

        out = pl.pallas_call(
            _mlp_kernel,
            out_shape=jax.ShapeDtypeStruct((B, NUM_CLASSES), jnp.float32),
            in_specs=[vmem] * 9,
            out_specs=vmem,
        )(x_flat, w1_t, b1r, w2_t, b2r, w3_t, b3r, wc_t, bcr)
        return out

    return forward


# ----------------------------- pure-JAX reference ---------------------------------
def reference_forward(params, x):
    (w1, b1), (w2, b2), (w3, b3), (wc, bc) = params
    h = x.reshape(x.shape[0], -1).astype(jnp.float32)
    hi = jax.lax.Precision.HIGHEST
    h = jnp.tanh(jnp.dot(h, w1.T, precision=hi) + b1)
    h = jnp.tanh(jnp.dot(h, w2.T, precision=hi) + b2)
    h = jnp.tanh(jnp.dot(h, w3.T, precision=hi) + b3)
    return jnp.dot(h, wc.T, precision=hi) + bc


# --------------------------------------- main -------------------------------------
if __name__ == "__main__":
    key = jax.random.PRNGKey(0)
    pkey, xkey = jax.random.split(key)
    params = init_params(pkey)

    x = jax.random.normal(xkey, (BATCH, IN_FEATURES), jnp.float32)

    forward = make_forward(params)
    out = forward(x)
    jax.block_until_ready(out)

    ref = reference_forward(params, x)
    assert out.shape == (BATCH, NUM_CLASSES), out.shape
    assert jnp.allclose(out, ref, atol=1e-4, rtol=1e-4), (out, ref)

    print("KERNEL_OK")
</pallas_src>

<mosaic_0001>
module attributes {stable_mosaic.version = 11 : i64} {
  func.func @_mlp_kernel(%arg0: memref<2x93xf32, #tpu.memory_space<vmem>>, %arg1: memref<93x128xf32, #tpu.memory_space<vmem>>, %arg2: memref<1x128xf32, #tpu.memory_space<vmem>>, %arg3: memref<128x256xf32, #tpu.memory_space<vmem>>, %arg4: memref<1x256xf32, #tpu.memory_space<vmem>>, %arg5: memref<256x128xf32, #tpu.memory_space<vmem>>, %arg6: memref<1x128xf32, #tpu.memory_space<vmem>>, %arg7: memref<128x2xf32, #tpu.memory_space<vmem>>, %arg8: memref<1x2xf32, #tpu.memory_space<vmem>>, %arg9: memref<2x2xf32, #tpu.memory_space<vmem>>) attributes {dimension_semantics = [], scalar_prefetch = 0 : i64, scratch_operands = 0 : i64, tpu.core_type = #tpu.core_type<tc>} {
    %c0 = arith.constant 0 : index
    %c0_0 = arith.constant 0 : index
    %0 = vector.load %arg0[%c0, %c0_0] : memref<2x93xf32, #tpu.memory_space<vmem>>, vector<2x93xf32>
    %c0_1 = arith.constant 0 : index
    %c0_2 = arith.constant 0 : index
    %1 = vector.load %arg1[%c0_1, %c0_2] : memref<93x128xf32, #tpu.memory_space<vmem>>, vector<93x128xf32>
    %cst = arith.constant dense<0.000000e+00> : vector<2x128xf32>
    %2 = tpu.matmul %0, %1, %cst {dimension_numbers = #tpu.dot_dimension_numbers<[1], [0], [0], [1], [0, 0, 1, 1], [], []>} : vector<2x93xf32>, vector<93x128xf32>, vector<2x128xf32> -> vector<2x128xf32>
    %c0_3 = arith.constant 0 : index
    %c0_4 = arith.constant 0 : index
    %3 = vector.load %arg2[%c0_3, %c0_4] : memref<1x128xf32, #tpu.memory_space<vmem>>, vector<1x128xf32>
    %4 = vector.broadcast %3 : vector<1x128xf32> to vector<2x128xf32>
    %5 = arith.addf %2, %4 : vector<2x128xf32>
    %6 = math.tanh %5 : vector<2x128xf32>
    %c0_5 = arith.constant 0 : index
    %c0_6 = arith.constant 0 : index
    %7 = vector.load %arg3[%c0_5, %c0_6] : memref<128x256xf32, #tpu.memory_space<vmem>>, vector<128x256xf32>
    %cst_7 = arith.constant dense<0.000000e+00> : vector<2x256xf32>
    %8 = tpu.matmul %6, %7, %cst_7 {dimension_numbers = #tpu.dot_dimension_numbers<[1], [0], [0], [1], [0, 0, 1, 1], [], []>} : vector<2x128xf32>, vector<128x256xf32>, vector<2x256xf32> -> vector<2x256xf32>
    %c0_8 = arith.constant 0 : index
    %c0_9 = arith.constant 0 : index
    %9 = vector.load %arg4[%c0_8, %c0_9] : memref<1x256xf32, #tpu.memory_space<vmem>>, vector<1x256xf32>
    %10 = vector.broadcast %9 : vector<1x256xf32> to vector<2x256xf32>
    %11 = arith.addf %8, %10 : vector<2x256xf32>
    %12 = math.tanh %11 : vector<2x256xf32>
    %c0_10 = arith.constant 0 : index
    %c0_11 = arith.constant 0 : index
    %13 = vector.load %arg5[%c0_10, %c0_11] : memref<256x128xf32, #tpu.memory_space<vmem>>, vector<256x128xf32>
    %cst_12 = arith.constant dense<0.000000e+00> : vector<2x128xf32>
    %14 = tpu.matmul %12, %13, %cst_12 {dimension_numbers = #tpu.dot_dimension_numbers<[1], [0], [0], [1], [0, 0, 1, 1], [], []>} : vector<2x256xf32>, vector<256x128xf32>, vector<2x128xf32> -> vector<2x128xf32>
    %c0_13 = arith.constant 0 : index
    %c0_14 = arith.constant 0 : index
    %15 = vector.load %arg6[%c0_13, %c0_14] : memref<1x128xf32, #tpu.memory_space<vmem>>, vector<1x128xf32>
    %16 = vector.broadcast %15 : vector<1x128xf32> to vector<2x128xf32>
    %17 = arith.addf %14, %16 : vector<2x128xf32>
    %18 = math.tanh %17 : vector<2x128xf32>
    %c0_15 = arith.constant 0 : index
    %c0_16 = arith.constant 0 : index
    %19 = vector.load %arg7[%c0_15, %c0_16] : memref<128x2xf32, #tpu.memory_space<vmem>>, vector<128x2xf32>
    %cst_17 = arith.constant dense<0.000000e+00> : vector<2x2xf32>
    %20 = tpu.matmul %18, %19, %cst_17 {dimension_numbers = #tpu.dot_dimension_numbers<[1], [0], [0], [1], [0, 0, 1, 1], [], []>} : vector<2x128xf32>, vector<128x2xf32>, vector<2x2xf32> -> vector<2x2xf32>
    %c0_18 = arith.constant 0 : index
    %c0_19 = arith.constant 0 : index
    %21 = vector.load %arg8[%c0_18, %c0_19] : memref<1x2xf32, #tpu.memory_space<vmem>>, vector<1x2xf32>
    %22 = vector.broadcast %21 : vector<1x2xf32> to vector<2x2xf32>
    %23 = arith.addf %20, %22 : vector<2x2xf32>
    %c0_20 = arith.constant 0 : index
    %c0_21 = arith.constant 0 : index
    %24 = vector.load %arg9[%c0_20, %c0_21] : memref<2x2xf32, #tpu.memory_space<vmem>>, vector<2x2xf32>
    tpu.vector_store %arg9[%c0_20, %c0_21], %23 {strides = array<i32>} : memref<2x2xf32, #tpu.memory_space<vmem>>, vector<2x2xf32>,
    return
  }
}

</mosaic_0001>

<bundles_post_ra>
// kernel: forward.1
= control target key start
LH: loop header
LB: loop body
LE: loop exit
PB: predicated region body
PF: predicated region fallthrough
CT: control target
= control target key end

     0   :  { %14 = vsyncpa [#allocation3], 0  ;;  %s988_s0 = inlined_call_operand.hbm [shape: f32[2,93], index: 0, kind: input, shape index: {}]   ;;  %s989_s1 = inlined_call_operand.hbm [shape: f32[93,128], index: 1, kind: input, shape index: {}]   ;;  %s990_s2 = inlined_call_operand.hbm [shape: f32[1,128], index: 2, kind: input, shape index: {}]   ;;  %s991_s3 = inlined_call_operand.hbm [shape: f32[128,256], index: 3, kind: input, shape index: {}]   ;;  %s992_s4 = inlined_call_operand.vmem [shape: f32[1,256], index: 4, kind: input, shape index: {}]   ;;  %s993_s5 = inlined_call_operand.hbm [shape: f32[256,128], index: 5, kind: input, shape index: {}]   ;;  %s994_s6 = inlined_call_operand.vmem [shape: f32[1,128], index: 6, kind: input, shape index: {}]   ;;  %s995_s7 = inlined_call_operand.hbm [shape: f32[128,2], index: 7, kind: input, shape index: {}]   ;;  %s996_s8 = inlined_call_operand.vmem [shape: f32[1,2], index: 8, kind: input, shape index: {}]   ;;  %s997_s9 = inlined_call_operand.hbm [shape: f32[2,2], index: 9, kind: output, shape index: {}]  }
   0x1   :  { %15 = vsyncpa [#allocation6], 0 }
   0x2   :  { %16 = vsyncpa [#allocation9], 0 }
   0x3   :  { %17 = vsyncpa [#allocation12], 0 }
   0x4   :  { %18 = vsyncpa [#allocation4], 0  ;;  %s853_s30 = smov [#allocation5]  }
   0x5   :  { %s34_s10 = sshll.u32 %s853_s30, 4  ;;  %s35_s10 = int_to_ptr.vmem [resolvable:$true] %s34_s10 }
   0x6   :  { %s711_s11 = scalar_lea.vmem %s35_s10, 1536  ;;  %p716_p1 = scmp.lt.s32.totalorder %s35_s10, %s35_s10 }
   0x7   :  { %p712_p0 = scmp.ne.s32.totalorder %s35_s10, %s711_s11  ;;  %p717_p2 = scmp.lt.s32.totalorder %s711_s11, %s711_s11 }
   0x9   :  { %p718_p3 = por %p717_p2, %p716_p1 }
   0xb   :  { %p719_p4 = pnand %p718_p3, %p712_p0 }
   0xd   :  { %722 = shalt.err (!%p719_p4)
}
   0xe   :  { %s854_s12 = smov 128   ;;  %s855_s13 = smov 8  }
   0xf   :  { %40 = dma.hbm_to_vmem [thread:$0]  %s989_s1, 1536, %s35_s10, [#allocation6], %s854_s12, %s854_s12, %s855_s13  }
  0x10   :  { %s856_s16 = smov [#allocation8]  }
  0x11   :  { %s56_s17 = sshll.u32 %s856_s16, 4  ;;  %s57_s17 = int_to_ptr.vmem [resolvable:$true] %s56_s17 }
  0x12   :  { %s731_s18 = scalar_lea.vmem %s57_s17, 4096  ;;  %p736_p6 = scmp.lt.s32.totalorder %s57_s17, %s57_s17 }
  0x13   :  { %p732_p5 = scmp.ne.s32.totalorder %s57_s17, %s731_s18  ;;  %p737_p7 = scmp.lt.s32.totalorder %s731_s18, %s731_s18 }
  0x15   :  { %p738_p8 = por %p737_p7, %p736_p6 }
  0x17   :  { %p739_p9 = pnand %p738_p8, %p732_p5 }
  0x19   :  { %742 = shalt.err (!%p739_p9)
}
  0x1a   :  { %s857_s19 = smov 256   ;;  %s858_s20 = smov 16  }
  0x1b   :  { %62 = dma.hbm_to_vmem [thread:$0]  %s991_s3, 4096, %s57_s17, [#allocation9], %s857_s19, %s857_s19, %s858_s20  }
  0x1c   :  { %s859_s23 = smov [#allocation2]   ;;  %s860_s25 = smov [#allocation7]  }
  0x1d   :  { %s25_s24 = sshll.u32 %s859_s23, 4  ;;  %s47_s1 = sshll.u32 %s860_s25, 4  ;;  %s26_s24 = int_to_ptr.vmem [resolvable:$true] %s25_s24  ;;  %s48_s1 = int_to_ptr.vmem [resolvable:$true] %s47_s1 }
  0x1e   :  { %s751_s26 = scalar_lea.vmem %s26_s24, 32  ;;  %p756_p11 = scmp.lt.s32.totalorder %s26_s24, %s26_s24 }
  0x1f   :  { %p752_p10 = scmp.ne.s32.totalorder %s26_s24, %s751_s26  ;;  %p757_p12 = scmp.lt.s32.totalorder %s751_s26, %s751_s26 }
  0x21   :  { %p758_p13 = por %p757_p12, %p756_p11 }
  0x23   :  { %p759_p0 = pnand %p758_p13, %p752_p10 }
  0x25   :  { %762 = shalt.err (!%p759_p0)
}
  0x26   :  { %28 = dma.hbm_to_vmem [thread:$0]  %s988_s0, 32, %s26_s24, [#allocation3]  }
  0x27   :  { %s771_s29 = scalar_lea.vmem %s48_s1, 16  ;;  %s775_s3 = scalar_lea.vmem %s48_s1, 32 }
  0x28   :  { %p772_p1 = scmp.ne.s32.totalorder %s48_s1, %s771_s29  ;;  %p776_p2 = scmp.lt.s32.totalorder %s48_s1, %s48_s1 }
  0x29   :  { %p777_p3 = scmp.lt.s32.totalorder %s775_s3, %s771_s29 }
  0x2b   :  { %p778_p4 = por %p777_p3, %p776_p2 }
  0x2d   :  { %p779_p5 = pnand %p778_p4, %p772_p1 }
  0x2f   :  { %782 = shalt.err (!%p779_p5)
}
  0x30   :  { %50 = dma.hbm_to_vmem [thread:$0]  %s990_s2, 16, %s48_s1, [#allocation6]  }
  0x31   :  { %s861_s11 = smov [#allocation10]   ;;  %s862_s15 = smov [#allocation11]  }
  0x32   :  { %s70_s14 = sshll.u32 %s861_s11, 4  ;;  %s84_s16 = sshll.u32 %s862_s15, 4  ;;  %s71_s14 = int_to_ptr.vmem [resolvable:$true] %s70_s14  ;;  %s85_s16 = int_to_ptr.vmem [resolvable:$true] %s84_s16 }
  0x33   :  { %s791_s17 = scalar_lea.vmem %s71_s14, 4096  ;;  %p796_p7 = scmp.lt.s32.totalorder %s71_s14, %s71_s14 }
  0x34   :  { %p792_p6 = scmp.ne.s32.totalorder %s71_s14, %s791_s17  ;;  %p797_p8 = scmp.lt.s32.totalorder %s791_s17, %s791_s17 }
  0x36   :  { %p798_p9 = por %p797_p8, %p796_p7 }
  0x38   :  { %p799_p10 = pnand %p798_p9, %p792_p6 }
  0x3a   :  { %802 = shalt.err (!%p799_p10)
}
  0x3b   :  { %76 = dma.hbm_to_vmem [thread:$0]  %s993_s5, 4096, %s71_s14, [#allocation9], %s854_s12, %s854_s12, %s855_s13  }
  0x3c   :  { %s811_s2 = scalar_lea.vmem %s85_s16, 2048  ;;  %p816_p12 = scmp.lt.s32.totalorder %s85_s16, %s85_s16 }
  0x3d   :  { %p812_p11 = scmp.ne.s32.totalorder %s85_s16, %s811_s2  ;;  %p817_p13 = scmp.lt.s32.totalorder %s811_s2, %s811_s2 }
  0x3f   :  { %p818_p0 = por %p817_p13, %p816_p12 }
  0x41   :  { %p819_p1 = pnand %p818_p0, %p812_p11 }
  0x43   :  { %822 = shalt.err (!%p819_p1)
}
  0x44   :  { %90 = dma.hbm_to_vmem [thread:$0]  %s995_s7, 2048, %s85_s16, [#allocation12], %s854_s12, %s854_s12, %s855_s13  }
  0x45   :  { %843 = dma.done.wait [#allocation3], 32  }
  0x46   :  { %844 = vsyncadd [#allocation3], 4294967264 }
  0x47   :  { %845 = dma.done.wait [#allocation6], 1552  }
  0x48   :  { %846 = vsyncadd [#allocation6], 4294965744 }
  0x49   :  { %847 = dma.done.wait [#allocation9], 8192  }
  0x4a   :  { %848 = vsyncadd [#allocation9], 4294959104 }
  0x4b   :  { %849 = dma.done.wait [#allocation12], 2048  }
  0x4c   :  { %850 = vsyncadd [#allocation12], 4294965248  ;;  %v863_v0 = vmov 0.0   ;;  %vm864_vm0 = vmmov 0   ;;  %vm135_vm1 = vcmask 1044480   ;;  %v122_v2 = vld [vmem:[#allocation5 + $0x50] sm:$0xff] }
  0x4d   :  { %620 = vmatprep.subr.mxu0 %v863_v0  ;;  %644 = vmatprep.mubr.msk.f32.mxu0 %vm864_vm0, %v863_v0  ;;  %v123_v1 = vld [vmem:[#allocation5 + $0x58] sm:$0x1f]  ;;  %v121_v3 = vld [vmem:[#allocation5 + $0x48] sm:$0xff]  ;;  %v120_v4 = vld [vmem:[#allocation5 + $0x40] sm:$0xff]  ;;  %vm131_vm2 = vcmask 760832   ;;  %s865_s22 = smov [#allocation13]  }
  0x4e   :  { %318 = vmatprep.mubr.f32.mxu1 %v863_v0  ;;  %621 = vmatpush3.msk.msra.mxu0 %vm135_vm1, %v123_v1  ;;  %v241_v5 = vld [vmem:[#allocation8 + $0xf8] sm:$0xff]  ;;  %v240_v6 = vld [vmem:[#allocation8 + $0xf0] sm:$0xff]  ;;  %v239_v7 = vld [vmem:[#allocation8 + $0xe8] sm:$0xff]  ;;  %s538_s23 = sshll.u32 %s865_s22, 4  ;;  %vm530_vm3 = vcmask 9216   ;;  %s539_s23 = int_to_ptr.vmem [resolvable:$true] %s538_s23 }
  0x4f   :  { %622 = vmatprep.subr.mxu0 %v863_v0  ;;  %254 = vmatprep.subr.mxu1 %v241_v5  ;;  %v238_v8 = vld [vmem:[#allocation8 + $0xe0] sm:$0xff]  ;;  %v119_v9 = vld [vmem:[#allocation5 + $0x38] sm:$0xff]  ;;  %v118_v12 = vld [vmem:[#allocation5 + $0x30] sm:$0xff]  ;;  %s823_s24 = scalar_lea.vmem %s539_s23, 32  ;;  %p828_p3 = scmp.lt.s32.totalorder %s539_s23, %s539_s23 }
  0x50   :  { %623 = vmatpush3.msra.mxu0 %v122_v2  ;;  %255 = vmatpush1.msra.mxu1 %v240_v6  ;;  %v237_v10 = vld [vmem:[#allocation8 + $0xd8] sm:$0xff]  ;;  %v236_v11 = vld [vmem:[#allocation8 + $0xd0] sm:$0xff]  ;;  %v235_v13 = vld [vmem:[#allocation8 + $0xc8] sm:$0xff]  ;;  %p824_p2 = scmp.ne.s32.totalorder %s539_s23, %s823_s24  ;;  %p829_p4 = scmp.lt.s32.totalorder %s823_s24, %s823_s24 }
  0x51   :  { %624 = vmatprep.subr.mxu0 %v863_v0  ;;  %256 = vmatprep.subr.mxu1 %v239_v7  ;;  %v234_v14 = vld [vmem:[#allocation8 + $0xc0] sm:$0xff]  ;;  %v233_v16 = vld [vmem:[#allocation8 + $0xb8] sm:$0xff]  ;;  %v232_v17 = vld [vmem:[#allocation8 + $0xb0] sm:$0xff] }
  0x52   :  { %625 = vmatpush3.msra.mxu0 %v121_v3  ;;  %257 = vmatpush1.msra.mxu1 %v238_v8  ;;  %v117_v15 = vld [vmem:[#allocation5 + $0x28] sm:$0xff]  ;;  %v116_v18 = vld [vmem:[#allocation5 + $0x20] sm:$0xff]  ;;  %v115_v21 = vld [vmem:[#allocation5 + $0x18] sm:$0xff]  ;;  %p830_p5 = por %p829_p4, %p828_p3 }
  0x53   :  { %626 = vmatprep.subr.mxu0 %v863_v0  ;;  %258 = vmatprep.subr.mxu1 %v237_v10  ;;  %v231_v19 = vld [vmem:[#allocation8 + $0xa8] sm:$0xff]  ;;  %v230_v20 = vld [vmem:[#allocation8 + $0xa0] sm:$0xff]  ;;  %v229_v22 = vld [vmem:[#allocation8 + $0x98] sm:$0xff] }
  0x54   :  { %627 = vmatpush3.msra.mxu0 %v120_v4  ;;  %259 = vmatpush1.msra.mxu1 %v236_v11  ;;  %v228_v23 = vld [vmem:[#allocation8 + $0x90] sm:$0xff]  ;;  %v227_v25 = vld [vmem:[#allocation8 + $0x88] sm:$0xff]  ;;  %v112_v27 = vld [vmem:[#allocation5] sm:$0xff]  ;;  %p831_p6 = pnand %p830_p5, %p824_p2 }
  0x55   :  { %628 = vmatprep.subr.mxu0 %v863_v0  ;;  %260 = vmatprep.subr.mxu1 %v235_v13  ;;  %v114_v24 = vld [vmem:[#allocation5 + $0x10] sm:$0xff]  ;;  %v113_v26 = vld [vmem:[#allocation5 + $0x8] sm:$0xff]  ;;  %v111_v28 = vld [vmem:[#allocation2] sm:$0x3] }
  0x56   :  { %629 = vmatpush3.msra.mxu0 %v119_v9  ;;  %261 = vmatpush1.msra.mxu1 %v234_v14  ;;  %v226_v29 = vld [vmem:[#allocation8 + $0x80] sm:$0xff]  ;;  %v225_v30 = vld [vmem:[#allocation8 + $0x78] sm:$0xff]  ;;  %v224_v31 = vld [vmem:[#allocation8 + $0x70] sm:$0xff] }
  0x57   :  { %630 = vmatprep.subr.mxu0 %v863_v0  ;;  %262 = vmatprep.subr.mxu1 %v233_v16  ;;  %v223_v32 = vld [vmem:[#allocation8 + $0x68] sm:$0xff]  ;;  %v222_v33 = vld [vmem:[#allocation8 + $0x60] sm:$0xff]  ;;  %v221_v34 = vld [vmem:[#allocation8 + $0x58] sm:$0xff] }
  0x58   :  { %631 = vmatpush3.msra.mxu0 %v118_v12  ;;  %263 = vmatpush1.msra.mxu1 %v232_v17  ;;  %v220_v35 = vld [vmem:[#allocation8 + $0x50] sm:$0xff]  ;;  %v219_v36 = vld [vmem:[#allocation8 + $0x48] sm:$0xff]  ;;  %v218_v37 = vld [vmem:[#allocation8 + $0x40] sm:$0xff] }
  0x59   :  { %632 = vmatprep.subr.mxu0 %v863_v0  ;;  %264 = vmatprep.subr.mxu1 %v231_v19  ;;  %v217_v38 = vld [vmem:[#allocation8 + $0x38] sm:$0xff]  ;;  %v216_v39 = vld [vmem:[#allocation8 + $0x30] sm:$0xff]  ;;  %v215_v40 = vld [vmem:[#allocation8 + $0x28] sm:$0xff] }
  0x5a   :  { %633 = vmatpush3.msra.mxu0 %v117_v15  ;;  %265 = vmatpush1.msra.mxu1 %v230_v20  ;;  %v214_v41 = vld [vmem:[#allocation8 + $0x20] sm:$0xff]  ;;  %v213_v42 = vld [vmem:[#allocation8 + $0x18] sm:$0xff]  ;;  %v212_v43 = vld [vmem:[#allocation8 + $0x10] sm:$0xff] }
  0x5b   :  { %634 = vmatprep.subr.mxu0 %v863_v0  ;;  %266 = vmatprep.subr.mxu1 %v229_v22  ;;  %v211_v44 = vld [vmem:[#allocation8 + $0x8] sm:$0xff]  ;;  %v210_v45 = vld [vmem:[#allocation8] sm:$0xff]  ;;  %v358_v46 = vld [vmem:[#allocation10 + $0xf8] sm:$0xff] }
  0x5c   :  { %635 = vmatpush3.msra.mxu0 %v116_v18  ;;  %267 = vmatpush1.msra.mxu1 %v228_v23  ;;  %v342_v47 = vld [vmem:[#allocation10 + $0x78] sm:$0xff]  ;;  %v357_v48 = vld [vmem:[#allocation10 + $0xf0] sm:$0xff]  ;;  %v356_v50 = vld [vmem:[#allocation10 + $0xe8] sm:$0xff] }
  0x5d   :  { %636 = vmatprep.subr.mxu0 %v863_v0  ;;  %268 = vmatprep.subr.mxu1 %v227_v25  ;;  %v341_v49 = vld [vmem:[#allocation10 + $0x70] sm:$0xff]  ;;  %v340_v51 = vld [vmem:[#allocation10 + $0x68] sm:$0xff]  ;;  %v355_v52 = vld [vmem:[#allocation10 + $0xe0] sm:$0xff]  ;;  %v244_v25 = vlaneseq }
  0x5e   :  { %637 = vmatpush3.msra.mxu0 %v115_v21  ;;  %269 = vmatpush1.msra.mxu1 %v226_v29  ;;  %v339_v53 = vld [vmem:[#allocation10 + $0x60] sm:$0xff]  ;;  %v354_v54 = vld [vmem:[#allocation10 + $0xd8] sm:$0xff]  ;;  %v353_v56 = vld [vmem:[#allocation10 + $0xd0] sm:$0xff] }
  0x5f   :  { %638 = vmatprep.subr.mxu0 %v863_v0  ;;  %270 = vmatprep.subr.mxu1 %v225_v30  ;;  %v338_v55 = vld [vmem:[#allocation10 + $0x58] sm:$0xff]  ;;  %v337_v57 = vld [vmem:[#allocation10 + $0x50] sm:$0xff]  ;;  %v352_v63 = vld [vmem:[#allocation10 + $0xc8] sm:$0xff] }
  0x60   :  { %639 = vmatpush3.msra.mxu0 %v114_v24  ;;  %271 = vmatpush1.msra.mxu1 %v224_v31  ;;  %v550_v58 = vld [vmem:[#allocation7] ss:$0 sm:$0xff]  ;;  %v336_v1 = vld [vmem:[#allocation10 + $0x48] sm:$0xff]  ;;  %v351_v2 = vld [vmem:[#allocation10 + $0xc0] sm:$0xff] }
  0x61   :  { %640 = vmatprep.subr.mxu0 %v863_v0  ;;  %272 = vmatprep.subr.mxu1 %v223_v32  ;;  %v335_v3 = vld [vmem:[#allocation10 + $0x40] sm:$0xff]  ;;  %v350_v4 = vld [vmem:[#allocation10 + $0xb8] sm:$0xff]  ;;  %v349_v6 = vld [vmem:[#allocation10 + $0xb0] sm:$0xff] }
  0x62   :  { %641 = vmatpush3.msra.mxu0 %v113_v26  ;;  %273 = vmatpush1.msra.mxu1 %v222_v33  ;;  %v334_v5 = vld [vmem:[#allocation10 + $0x38] sm:$0xff]  ;;  %v333_v7 = vld [vmem:[#allocation10 + $0x30] sm:$0xff]  ;;  %v348_v8 = vld [vmem:[#allocation10 + $0xa8] sm:$0xff]  ;;  %v245_v26 = vshrl.u32 %v244_v25, 7 }
  0x63   :  { %642 = vmatprep.subr.mxu0 %v863_v0  ;;  %274 = vmatprep.subr.mxu1 %v221_v34  ;;  %v332_v9 = vld [vmem:[#allocation10 + $0x28] sm:$0xff]  ;;  %v347_v10 = vld [vmem:[#allocation10 + $0xa0] sm:$0xff]  ;;  %v346_v12 = vld [vmem:[#allocation10 + $0x98] sm:$0xff] }
  0x64   :  { %643 = vmatpush3.msra.mxu0 %v112_v27  ;;  %275 = vmatpush1.msra.mxu1 %v220_v35  ;;  %v331_v11 = vld [vmem:[#allocation10 + $0x20] sm:$0xff]  ;;  %v330_v13 = vld [vmem:[#allocation10 + $0x18] sm:$0xff]  ;;  %v345_v14 = vld [vmem:[#allocation10 + $0x90] sm:$0xff]  ;;  %v246_v27 = vsub.s32 0, %v245_v26  ;;  %v250_v29 = vsub.s32 1, %v245_v26 }
  0x65   :  { %645 = vmatmul.mubr.msk.f32.vlgmr.msra.gmra.mxu0 %vm131_vm2, %v111_v28  ;;  %276 = vmatprep.subr.mxu1 %v219_v36  ;;  %v329_v15 = vld [vmem:[#allocation10 + $0x10] sm:$0xff]  ;;  %v344_v16 = vld [vmem:[#allocation10 + $0x88] sm:$0xff]  ;;  %v343_v18 = vld [vmem:[#allocation10 + $0x80] sm:$0xff] }
  0x66   :  { %277 = vmatpush1.msra.mxu1 %v218_v37  ;;  %568 = vmatprep.subr.mxu0 %v358_v46  ;;  %v328_v17 = vld [vmem:[#allocation10 + $0x8] sm:$0xff]  ;;  %v327_v19 = vld [vmem:[#allocation10] sm:$0xff]  ;;  %v452_v20 = vld [vmem:[#allocation11 + $0x78] sm:$0xff] }
  0x67   :  { %278 = vmatprep.subr.mxu1 %v217_v38  ;;  %569 = vmatpush3.msra.mxu0 %v342_v47  ;;  %v451_v21 = vld [vmem:[#allocation11 + $0x70] sm:$0xff]  ;;  %v450_v22 = vld [vmem:[#allocation11 + $0x68] sm:$0xff]  ;;  %v449_v23 = vld [vmem:[#allocation11 + $0x60] sm:$0xff] }
  0x68   :  { %279 = vmatpush1.msra.mxu1 %v216_v39  ;;  %570 = vmatprep.subr.mxu0 %v357_v48  ;;  %v448_v24 = vld [vmem:[#allocation11 + $0x58] sm:$0xff]  ;;  %v447_v38 = vld [vmem:[#allocation11 + $0x50] sm:$0xff]  ;;  %v446_v39 = vld [vmem:[#allocation11 + $0x48] sm:$0xff] }
  0x69   :  { %280 = vmatprep.subr.mxu1 %v215_v40  ;;  %571 = vmatpush3.msra.mxu0 %v341_v49  ;;  %v242_v28 = vld [vmem:[%s992_s4] sm:$0x3]  ;;  %v445_v40 = vld [vmem:[#allocation11 + $0x40] sm:$0xff]  ;;  %v439_v46 = vld [vmem:[#allocation11 + $0x10] sm:$0xff] }
  0x6a   :  { %281 = vmatpush1.msra.mxu1 %v214_v41  ;;  %572 = vmatprep.subr.mxu0 %v356_v50  ;;  %v247_v30 = vrot.slane %v242_v28, %v246_v27  ;;  %v251_v31 = vrot.slane %v242_v28, %v250_v29  ;;  %v444_v41 = vld [vmem:[#allocation11 + $0x38] sm:$0xff]  ;;  %v438_v47 = vld [vmem:[#allocation11 + $0x8] sm:$0xff]  ;;  %v437_v48 = vld [vmem:[#allocation11] sm:$0xff] }
  0x6b   :  { %282 = vmatprep.subr.mxu1 %v213_v42  ;;  %573 = vmatpush3.msra.mxu0 %v340_v51  ;;  %v443_v42 = vld [vmem:[#allocation11 + $0x30] sm:$0xff]  ;;  %v553_v50 = vld [vmem:[%s994_s6] ss:$0 sm:$0xff] }
  0x6c   :  { %283 = vmatpush1.msra.mxu1 %v212_v43  ;;  %574 = vmatprep.subr.mxu0 %v355_v52  ;;  %v442_v43 = vld [vmem:[#allocation11 + $0x28] sm:$0xff] }
  0x6d   :  { %284 = vmatprep.subr.mxu1 %v211_v44  ;;  %575 = vmatpush3.msra.mxu0 %v339_v53  ;;  %v441_v44 = vld [vmem:[#allocation11 + $0x20] sm:$0xff] }
  0x6e   :  { %285 = vmatpush1.msra.mxu1 %v210_v45  ;;  %576 = vmatprep.subr.mxu0 %v354_v54  ;;  %v440_v45 = vld [vmem:[#allocation11 + $0x18] sm:$0xff] }
  0x6f   :  { %647 = vmatprep.subr.mxu1 %v863_v0  ;;  %577 = vmatpush3.msra.mxu0 %v338_v55  ;;  %v554_v55 = vld [vmem:[%s996_s8] ss:$0 sm:$0xff] }
  0x70   :  { %578 = vmatprep.subr.mxu0 %v353_v56 }
  0x71   :  { %579 = vmatpush3.msra.mxu0 %v337_v57 }
  0x72   :  { %580 = vmatprep.subr.mxu0 %v352_v63 }
  0x73   :  { %581 = vmatpush3.msra.mxu0 %v336_v1 }
  0x74   :  { %582 = vmatprep.subr.mxu0 %v351_v2 }
  0x75   :  { %583 = vmatpush3.msra.mxu0 %v335_v3 }
  0x76   :  { %584 = vmatprep.subr.mxu0 %v350_v4 }
  0x77   :  { %585 = vmatpush3.msra.mxu0 %v334_v5 }
  0x78   :  { %586 = vmatprep.subr.mxu0 %v349_v6 }
  0x79   :  { %587 = vmatpush3.msra.mxu0 %v333_v7 }
  0x7a   :  { %588 = vmatprep.subr.mxu0 %v348_v8 }
  0x7b   :  { %589 = vmatpush3.msra.mxu0 %v332_v9 }
  0x7c   :  { %590 = vmatprep.subr.mxu0 %v347_v10 }
  0x7d   :  { %591 = vmatpush3.msra.mxu0 %v331_v11 }
  0x7e   :  { %592 = vmatprep.subr.mxu0 %v346_v12 }
  0x7f   :  { %593 = vmatpush3.msra.mxu0 %v330_v13 }
  0x80   :  { %594 = vmatprep.subr.mxu0 %v345_v14 }
  0x81   :  { %595 = vmatpush3.msra.mxu0 %v329_v15 }
  0x82   :  { %596 = vmatprep.subr.mxu0 %v344_v16 }
  0x83   :  { %597 = vmatpush3.msra.mxu0 %v328_v17 }
  0x84   :  { %598 = vmatprep.subr.mxu0 %v343_v18 }
  0x85   :  { %599 = vmatpush3.msra.mxu0 %v327_v19 }
 0x125   :  { %v205_v59 = vpop.f32.mrf.mxu0 }
 0x126   :  { %v206_v60 = vadd.f32 %v550_v58, %v205_v59 }
 0x127   :  { %v646_v61 = vpop.f32.mrf.mxu0 }
 0x128   :  { %695 = vtanh.f32 %v206_v60 }
 0x135   :  { %v696_v62 = vpop.eup %695 }
 0x136   :  { %319 = vmatmul.mubr.f32.vlgmr.msra.gmra.mxu1 %v696_v62 }
 0x137   :  { %679 = vmatprep.mubr.msk.f32.mxu1 %vm864_vm0, %v863_v0  ;;  %648 = vmatpush3.msra.mxu1 %v452_v20 }
 0x138   :  { %649 = vmatprep.subr.mxu1 %v863_v0 }
 0x139   :  { %650 = vmatpush3.msra.mxu1 %v451_v21 }
 0x13a   :  { %651 = vmatprep.subr.mxu1 %v863_v0 }
 0x13b   :  { %652 = vmatpush3.msra.mxu1 %v450_v22 }
 0x13c   :  { %653 = vmatprep.subr.mxu1 %v863_v0 }
 0x13d   :  { %654 = vmatpush3.msra.mxu1 %v449_v23 }
 0x13e   :  { %655 = vmatprep.subr.mxu1 %v863_v0 }
 0x13f   :  { %656 = vmatpush3.msra.mxu1 %v448_v24 }
 0x140   :  { %657 = vmatprep.subr.mxu1 %v863_v0 }
 0x141   :  { %658 = vmatpush3.msra.mxu1 %v447_v38 }
 0x142   :  { %659 = vmatprep.subr.mxu1 %v863_v0 }
 0x143   :  { %660 = vmatpush3.msra.mxu1 %v446_v39 }
 0x144   :  { %661 = vmatprep.subr.mxu1 %v863_v0 }
 0x145   :  { %662 = vmatpush3.msra.mxu1 %v445_v40 }
 0x146   :  { %663 = vmatprep.subr.mxu1 %v863_v0 }
 0x147   :  { %664 = vmatpush3.msra.mxu1 %v444_v41 }
 0x148   :  { %665 = vmatprep.subr.mxu1 %v863_v0 }
 0x149   :  { %666 = vmatpush3.msra.mxu1 %v443_v42 }
 0x14a   :  { %667 = vmatprep.subr.mxu1 %v863_v0 }
 0x14b   :  { %668 = vmatpush3.msra.mxu1 %v442_v43 }
 0x14c   :  { %669 = vmatprep.subr.mxu1 %v863_v0 }
 0x14d   :  { %670 = vmatpush3.msra.mxu1 %v441_v44 }
 0x14e   :  { %671 = vmatprep.subr.mxu1 %v863_v0 }
 0x14f   :  { %672 = vmatpush3.msra.mxu1 %v440_v45 }
 0x150   :  { %673 = vmatprep.subr.mxu1 %v863_v0 }
 0x151   :  { %674 = vmatpush3.msra.mxu1 %v439_v46 }
 0x152   :  { %675 = vmatprep.subr.mxu1 %v863_v0 }
 0x153   :  { %676 = vmatpush3.msra.mxu1 %v438_v47 }
 0x154   :  { %677 = vmatprep.subr.mxu1 %v863_v0 }
 0x155   :  { %678 = vmatpush3.msra.mxu1 %v437_v48 }
 0x1f6   :  { %v320_v32 = vpop.f32.mrf.mxu1 }
 0x1f7   :  { %v321_v33 = vadd.f32 %v320_v32, %v247_v30 }
 0x1f8   :  { %v322_v34 = vpop.f32.mrf.mxu1 }
 0x1f9   :  { %v323_v35 = vadd.f32 %v322_v34, %v251_v31 }
 0x1fb   :  { %697 = vtanh.f32 %v323_v35 }
 0x1fc   :  { %699 = vtanh.f32 %v321_v33 }
 0x208   :  { %v698_v36 = vpop.eup %697 }
 0x209   :  { %v700_v37 = vpop.eup %699  ;;  %430 = vmatprep.mubr.f32.mxu0 %v698_v36 }
 0x20a   :  { %431 = vmatmul.mubr.f32.vlgmr.msra.gmra.mxu0 %v700_v37 }
 0x2ca   :  { %v600_v49 = vpop.f32.mrf.mxu0 }
 0x2cc   :  { %v601_v51 = vpop.f32.mrf.mxu0 }
 0x2cd   :  { %v602_v52 = vadd.f32 %v601_v51, %v600_v49 }
 0x2cf   :  { %v433_v53 = vadd.f32 %v602_v52, %v553_v50 }
 0x2d1   :  { %701 = vtanh.f32 %v433_v53 }
 0x2de   :  { %v702_v54 = vpop.eup %701 }
 0x2df   :  { %680 = vmatmul.mubr.f32.vlgmr.msra.gmra.mxu1 %v702_v54 }
 0x39f   :  { %v526_v56 = vpop.f32.mrf.mxu1 }
 0x3a0   :  { %v527_v0 = vadd.f32 %v554_v55, %v526_v56 }
 0x3a1   :  { %v681_v57 = vpop.f32.mrf.mxu1 }
 0x3a2   :  { %531 = vst.msk [vmem:[#allocation13] sm:$0x3] %vm530_vm3, %v527_v0 }
 0x3a3   :  { %834 = shalt.err (!%p831_p6)
}
 0x3a4   :  { %541 = dma.vmem_to_hbm [thread:$0]  %s539_s23, 32, %s997_s9, [#allocation4]  }
 0x3a5   :  { %851 = dma.done.wait [#allocation4], 32  }
 0x3a6   :  { %852 = vsyncadd [#allocation4], 4294967264 }
 0x3a7   :  { %545 = vsyncpa [#allocation3], 1 }
 0x3a8   :  { %546 = vsyncpa [#allocation6], 1 }
 0x3a9   :  { %547 = vsyncpa [#allocation9], 1 }
 0x3aa   :  { %548 = vsyncpa [#allocation12], 1 }
 0x3ab   :  { %549 = vsyncpa [#allocation4], 1 }

</bundles_post_ra>
